<compile_context>
chip_gen: v7x
topology: tpu7x:2x2x1
jax: 0.10.0
libtpu: 0.0.40
codegen_flags: <defaults>
</compile_context>

<pallas_src>
import jax
import jax.numpy as jnp
from jax.experimental import pallas as pl
from jax.experimental.pallas import tpu as pltpu

_LANE = 128                       # TPU lane width
_TARGET_TILE_BYTES = 4 << 20      # ~4 MiB per tile buffer (in + out double-buffered ~16 MiB)
_VMEM_LIMIT_BYTES = 32 << 20      # safe on v5e/v6e/v7x; raises v5e's 16 MiB default
_MIN_PALLAS_BYTES = 256 << 10     # below this, a fused XLA elementwise is strictly faster


def _sublane(dtype) -> int:
    """Minimum second-to-last tile multiple for this dtype (8 f32, 16 bf16, 32 int8/fp8)."""
    itemsize = jnp.dtype(dtype).itemsize
    return max(8, 32 // itemsize)


def _emission_scale_kernel(latent_ref, scale_ref):
    # scale = sqrt(exp(x)) == exp(0.5*x): single EUP op; mul is free VALU work.
    # Upcast to f32 for the transcendental, store back in the output dtype.
    x = latent_ref[...].astype(jnp.float32)
    scale_ref[...] = jnp.exp(0.5 * x).astype(scale_ref.dtype)


def _emission_scale_pallas(latent):
    dtype = latent.dtype
    itemsize = jnp.dtype(dtype).itemsize
    shape = latent.shape
    n = int(latent.size)

    # ---- free (layout-preserving) 2-D view: no pad, no extra HBM pass -------
    if n % _LANE == 0:
        x2d = latent.reshape(-1, _LANE)           # lane-dense slab
    elif latent.ndim >= 2:
        x2d = latent.reshape(-1, shape[-1])       # merge leading dims only
    else:
        x2d = latent.reshape(1, -1)

    rows, cols = x2d.shape
    sub = _sublane(dtype)
    row_bytes = cols * itemsize

    if cols % _LANE != 0 and row_bytes > _TARGET_TILE_BYTES:
        # TODO(synk): a single non-128-aligned row exceeds the per-tile VMEM
        # budget; fall back to fused XLA rather than a block-column pipeline.
        return jnp.exp(0.5 * latent.astype(jnp.float32)).astype(dtype)

    # ---- tile-row selection ---------------------------------------------------
    cap = max(sub, (_TARGET_TILE_BYTES // row_bytes) // sub * sub)
    if rows <= sub:
        tile_rows = rows                          # whole (tiny) array: block == full dims
    elif rows >= 2 * sub:
        ceil_half = (rows + 1) // 2               # keep >= 2 grid steps (v7x: 2 TensorCores)
        half = -(-ceil_half // sub) * sub
        tile_rows = min(cap, half)
    else:
        tile_rows = sub

    grid = (pl.cdiv(rows, tile_rows),)            # non-dividing edge block is masked by Pallas

    scale2d = pl.pallas_call(
        _emission_scale_kernel,
        out_shape=jax.ShapeDtypeStruct((rows, cols), dtype),
        grid=grid,
        in_specs=[pl.BlockSpec((tile_rows, cols), lambda i: (i, 0))],
        out_specs=pl.BlockSpec((tile_rows, cols), lambda i: (i, 0)),
        compiler_params=pltpu.CompilerParams(
            dimension_semantics=("parallel",),
            vmem_limit_bytes=_VMEM_LIMIT_BYTES,
        ),
        cost_estimate=pl.CostEstimate(
            flops=n, transcendentals=n, bytes_accessed=2 * n * itemsize),
    )(x2d)

    # Contiguous reshape back — free, no slicing / no extra kernel.
    return scale2d.reshape(shape)


def emission_forward(mult, latents, *, expand_loc=False,
                     min_pallas_bytes=_MIN_PALLAS_BYTES):
    """Normal(loc, scale) parameters of Emission.forward.

    mult:    0-d (or shape-(1,)) emission multiplier (dim == 1 / Normal branch).
    latents: latents[-1] directly, or a list/tuple of latents (last is used).
    Returns (loc, scale). `loc` is the 0-d scalar (as in torch); pass
    expand_loc=True to broadcast it to the latent's shape.
    """
    if isinstance(latents, (list, tuple)):
        latents = latents[-1]
    latent = jnp.asarray(latents)
    dtype = latent.dtype
    itemsize = jnp.dtype(dtype).itemsize

    # torch.diag(mult.unsqueeze(-1)).squeeze() == mult for scalar mult.
    # TODO(synk): multivariate (dim > 1 / MultivariateNormal) branch not implemented.
    # Note: cast to latent.dtype can lose precision vs. an f32/f64 torch param if
    # latent is bf16 — acceptable for this model.
    loc = jnp.asarray(mult).reshape(()).astype(dtype)

    n = int(latent.size)
    if n == 0:
        scale = jnp.zeros(latent.shape, dtype)
    elif n * itemsize < min_pallas_bytes:
        # Tiny-input fast path: launch + DMA setup dominates; let XLA fuse it.
        scale = jnp.exp(0.5 * latent.astype(jnp.float32)).astype(dtype)
    else:
        scale = _emission_scale_pallas(latent)

    if expand_loc:
        loc = jnp.broadcast_to(loc, latent.shape)
    return loc, scale


if __name__ == "__main__":
    key = jax.random.PRNGKey(0)
    k1, k2, k3 = jax.random.split(key, 3)

    # Deterministic "parameter": scalar emission multiplier (dim == 1 branch).
    mult = jnp.asarray(0.8, dtype=jnp.float32)

    # 1) Small (batch, particles): tiny-input fast path (fused XLA, no launch).
    B, P = 2, 1024
    latent = 0.5 * jax.random.normal(k1, (B, P), dtype=jnp.float32)
    loc, scale = emission_forward(mult, latent, expand_loc=True)
    jax.block_until_ready((loc, scale))
    assert jnp.allclose(scale, jnp.sqrt(jnp.exp(latent)), rtol=1e-5, atol=1e-6)
    assert jnp.allclose(loc, jnp.full((B, P), mult, dtype=jnp.float32))

    # 2) Larger, 128-aligned input: Pallas path on a lane-dense (rows, 128) slab,
    #    2-step "parallel" grid.
    B2, P2 = 64, 4096
    latent2 = 0.5 * jax.random.normal(k2, (B2, P2), dtype=jnp.float32)
    loc2, scale2 = emission_forward(mult, latent2)
    jax.block_until_ready(scale2)
    assert jnp.allclose(scale2, jnp.sqrt(jnp.exp(latent2)), rtol=1e-5, atol=1e-6)
    assert loc2.shape == ()  # scalar loc, broadcast by the Normal downstream

    # 3) Non-aligned shape forced through the Pallas path (whole-array block,
    #    no pad / no post-slice).
    B3, P3 = 3, 100
    latent3 = 0.3 * jax.random.normal(k3, (B3, P3), dtype=jnp.float32)
    loc3, scale3 = emission_forward(mult, latent3, min_pallas_bytes=0)
    jax.block_until_ready(scale3)
    assert jnp.allclose(scale3, jnp.sqrt(jnp.exp(latent3)), rtol=1e-5, atol=1e-6)

    print("KERNEL_OK")
</pallas_src>

<mosaic_0001>
module attributes {stable_mosaic.version = 11 : i64} {
  func.func @_emission_scale_kernel(%arg0: i32, %arg1: memref<1024x128xf32, #tpu.memory_space<vmem>>, %arg2: memref<1024x128xf32, #tpu.memory_space<vmem>>) attributes {dimension_semantics = [#tpu.dimension_semantics<parallel>], iteration_bounds = array<i64: 2>, scalar_prefetch = 0 : i64, scratch_operands = 0 : i64, tpu.core_type = #tpu.core_type<tc>, window_params = [{transform_indices = @transform_0, window_bounds = array<i64: 1024, 128>}, {transform_indices = @transform_1, window_bounds = array<i64: 1024, 128>}]} {
    %c0 = arith.constant 0 : index
    %c0_0 = arith.constant 0 : index
    %0 = vector.load %arg1[%c0, %c0_0] : memref<1024x128xf32, #tpu.memory_space<vmem>>, vector<1024x128xf32>
    %cst = arith.constant 5.000000e-01 : f32
    %1 = vector.broadcast %cst : f32 to vector<1024x128xf32>
    %2 = arith.mulf %1, %0 : vector<1024x128xf32>
    %3 = math.exp %2 : vector<1024x128xf32>
    %c0_1 = arith.constant 0 : index
    %c0_2 = arith.constant 0 : index
    %4 = vector.load %arg2[%c0_1, %c0_2] : memref<1024x128xf32, #tpu.memory_space<vmem>>, vector<1024x128xf32>
    tpu.vector_store %arg2[%c0_1, %c0_2], %3 {strides = array<i32>} : memref<1024x128xf32, #tpu.memory_space<vmem>>, vector<1024x128xf32>,
    return
  }
  func.func @transform_0(%arg0: i32) -> (i32, i32) {
    %c0_i32 = arith.constant 0 : i32
    %c0_i32_0 = arith.constant 0 : i32
    return %arg0, %c0_i32 : i32, i32
  }
  func.func @transform_1(%arg0: i32) -> (i32, i32) {
    %c0_i32 = arith.constant 0 : i32
    %c0_i32_0 = arith.constant 0 : i32
    return %arg0, %c0_i32 : i32, i32
  }
}

</mosaic_0001>

<bundles_post_ra>
// kernel: tpu_custom_call.1
= control target key start
LH: loop header
LB: loop body
LE: loop exit
PB: predicated region body
PF: predicated region fallthrough
CT: control target
= control target key end

     0   :  { %6 = vsyncpa [#allocation3], 0  ;;  %s1727_s0 = inlined_call_operand.hbm [shape: f32[2048,128], index: 0, kind: input, shape index: {}]   ;;  %s1728_s1 = inlined_call_operand.hbm [shape: f32[2048,128], index: 1, kind: output, shape index: {}]  }
   0x1   :  { %8 = vsyncpa [#allocation3 + $0x1], 0 }
   0x2   :  { %9 = vsyncpa [#allocation4], 0 }
   0x3   :  { %11 = vsyncpa [#allocation4 + $0x1], 0  ;;  %s1300_s6 = smov 0   ;;  %s1302_s7 = smov 0  }
   0x4   :  { %s1304_s8 = smov 0   ;;  %s1306_s9 = smov 0  }
   0x5 LB: > { %s1321_s10 = sadd.s32 4294967295, %s1282_s9   ;;  %s864_s11 = sadd.s32 4294967294, %s1282_s9   ;;  %s1282_s9 = sphi %s1306_s9, %s1741_s9   ;;  %s1278_s8 = sphi %s1304_s8, %s1740_s8   ;;  %s1274_s7 = sphi %s1302_s7, %s1739_s7   ;;  %s1270_s6 = sphi %s1300_s6, %s1738_s6  }
   0x6   : > { %s1325_s12 = sadd.s32 1, %s1282_s9   ;;  %s24_s13 = sadd.s32 1, %s1278_s8 }
   0x7   : > { %s21_s14 = ssub.s32 %s1282_s9, %s1325_s12  ;;  %p31_p0 = scmp.ne.s32.totalorder %s1278_s8, %s1274_s7 }
   0x8   : > { %p22_p1 = scmp.eq.s32.totalorder %s21_s14, 0  ;;  %p32_p2 = scmp.eq.s32.totalorder %s1282_s9, 0 }
   0x9   : > { %p37_p3 = scmp.ne.s32.totalorder %s1274_s7, %s1270_s6  ;;  %p38_p4 = scmp.eq.s32.totalorder %s1321_s10, 0 }
   0xa   : > { %s1337_s15 = scalar_select %p22_p1, %s1278_s8, %s24_s13  }
   0xb   : > { %p1339_p5 = por %p32_p2, %p31_p0  ;;  %p1343_p6 = por %p38_p4, %p37_p3 }
   0xc   : > { %p61_p7 = scmp.eq.s32.totalorder %s1321_s10, 1  ;;  %p67_p8 = scmp.eq.s32.totalorder %s864_s11, 1 }
   0xd   : > { %p892_p10 = scmp.lt.s32.totalorder %s1282_s9, 2  ;;  %s87_s20 = sand.u32 1, %s1278_s8  }
   0xe   : > { %p1350_p11 = por %p61_p7, %p31_p0  ;;  %p1354_p12 = por %p67_p8, %p37_p3 }
   0xf   : > { %s878_s21 = sshll.u32 %s1282_s9, 14  ;;  %s867_s22 = sshll.u32 %s87_s20, 10 }
  0x10   : > { %s1732_s18 = scalar_select %p1350_p11, 1, 0 }
  0x11   : > { %s1733_s19 = scalar_select %p1354_p12, 1, 0 }
  0x12   : > { %s1363_s25 = scalar_lea.hbm %s1727_s0, %s878_s21  ;;  %s91_s26 = scalar_lea.vmem [#allocation2], %s867_s22 }
  0x13   : > { %s98_s27 = sshll.u32 %s91_s26, 4  ;;  %p1367_p13 = pnand %p892_p10, %p1339_p5  ;;  %s1371_s27 = int_to_ptr.vmem [resolvable:$true] %s98_s27 }
  0x14   : > { %s1373_s29 = scalar_lea.sflag [#allocation3], %s87_s20  ;;  %s1186_s30 = scalar_lea.hbm %s1363_s25, 16384 }
  0x15   : > { %p1187_p0 = scmp.ne.s32.totalorder %s1363_s25, %s1186_s30  ;;  %p1188_p1 = pneg %p1367_p13 }
  0x16   : > { %s1191_s4 = scalar_lea.hbm %s1727_s0, 32768  ;;  %p1192_p4 = scmp.lt.u32.totalorder %s1363_s25, %s1727_s0 }
  0x17   : > { %p1189_p2 = pnand %p1188_p1, %p1187_p0  ;;  %p1193_p5 = scmp.lt.u32.totalorder %s1191_s4, %s1186_s30 }
  0x18   : > { %p1195_p8 = scmp.lt.u32.totalorder %s1186_s30, %s1363_s25 }
  0x19   : > { %p1190_p3 = pneg %p1189_p2  ;;  %p1194_p7 = por %p1193_p5, %p1192_p4 }
  0x1b   : > { %p1196_p10 = por %p1195_p8, %p1194_p7 }
  0x1d   : > { %p1197_p9 = pnand %p1196_p10, %p1190_p3 }
  0x1f   : > { %1200 = shalt.err (!%p1197_p9)
}
  0x20   : > { %s1201_s13 = scalar_lea.vmem %s1371_s27, 16384  ;;  %s1284_s14 = smov [#allocation2]  }
  0x21   : > { %p1202_p0 = scmp.ne.s32.totalorder %s1371_s27, %s1201_s13  ;;  %s1206_s16 = sshll.u32 %s1284_s14, 4  ;;  %s1207_s16 = int_to_ptr.vmem [resolvable:$false] %s1206_s16 }
  0x22   : > { %s1208_s20 = scalar_lea.vmem %s1207_s16, 32768  ;;  %p1209_p11 = scmp.lt.s32.totalorder %s1371_s27, %s1207_s16 }
  0x23   : > { %p1204_p2 = pnand %p1202_p0, %p1188_p1  ;;  %p1210_p4 = scmp.lt.s32.totalorder %s1208_s20, %s1201_s13 }
  0x25   : > { %p1205_p12 = pneg %p1204_p2  ;;  %p1211_p5 = por %p1210_p4, %p1209_p11 }
  0x27   : > { %p1212_p7 = pnand %p1211_p5, %p1205_p12 }
  0x29   : > { %1215 = shalt.err (!%p1212_p7)
}
  0x2a   : > { %s1285_s21 = smov 128   ;;  %s1286_s22 = smov 8  }
  0x2b   : > { %887 = dma.hbm_to_vmem [thread:$0]  (!%p1367_p13), %s1363_s25, 16384, %s1371_s27, %s1373_s29, %s1285_s21, %s1285_s21, %s1286_s22  }
  0x2c   : > { %p870_p9 = scmp.ge.s32.totalorder %s1282_s9, 1  ;;  %p106_p1 = scmp.lt.s32.totalorder %s1282_s9, 3 }
  0x2e   : > { %p107_p3 = pnand %p870_p9, %p106_p1 }
  0x2f   : > { %s1404_s23 = sand.u32 (!%p107_p3), 1, %s1274_s7  }
  0x30   : > { %110 = sbr.rel (%p107_p3) target bundleno = 214 (0xd6), region = 24  ;;  %s871_s24 = sshll.u32 (!%p107_p3), %s1404_s23, 10 }
  0x31   : > { %s113_s26 = scalar_lea.sflag (!%p107_p3), [#allocation3], %s1404_s23  ;;  %s1410_s30 = scalar_lea.vmem (!%p107_p3), [#allocation2], %s871_s24 }
  0x37   : > { %1261 = dma.done.wait (%p1343_p6), %s113_s26, 16384  }
  0x38   : > { %1263 = vsyncadd (%p1343_p6), %s113_s26, 4294950912  ;;  %v137_v0 = vld [vmem:[%s1410_s30] sm:$0xff]  ;;  %v138_v1 = vld [vmem:[%s1410_s30 + $0x8] sm:$0xff]  ;;  %s1440_s17 = scalar_lea.vmem [#allocation5], %s871_s24  ;;  %s879_s25 = sshll.u32 %s1321_s10, 14 }
  0x39   : > { %v139_v2 = vld [vmem:[%s1410_s30 + $0x10] sm:$0xff]  ;;  %v265_v3 = vmul.f32 0.5, %v137_v0  ;;  %v266_v4 = vmul.f32 0.5, %v138_v1  ;;  %v140_v6 = vld [vmem:[%s1410_s30 + $0x18] sm:$0xff]  ;;  %v141_v7 = vld [vmem:[%s1410_s30 + $0x20] sm:$0xff]  ;;  %s791_s27 = sshll.u32 %s1440_s17, 4  ;;  %s1678_s2 = scalar_lea.hbm %s1728_s1, %s879_s25  ;;  %s1680_s27 = int_to_ptr.vmem [resolvable:$true] %s791_s27 }
  0x3a   : > { %v267_v5 = vmul.f32 0.5, %v139_v2  ;;  %v142_v8 = vld [vmem:[%s1410_s30 + $0x28] sm:$0xff]  ;;  %v268_v9 = vmul.f32 0.5, %v140_v6  ;;  %v269_v10 = vmul.f32 0.5, %v141_v7  ;;  %v143_v12 = vld [vmem:[%s1410_s30 + $0x30] sm:$0xff]  ;;  %v144_v13 = vld [vmem:[%s1410_s30 + $0x38] sm:$0xff] }
  0x3b   : > { %v270_v11 = vmul.f32 0.5, %v142_v8  ;;  %v145_v14 = vld [vmem:[%s1410_s30 + $0x40] sm:$0xff]  ;;  %v393_v15 = vmul.f32 1.442695, %v265_v3  ;;  %v395_v16 = vmul.f32 1.442695, %v266_v4 }
  0x3c   : > { %v397_v17 = vmul.f32 1.442695, %v267_v5  ;;  %v399_v18 = vmul.f32 1.442695, %v268_v9  ;;  %v401_v19 = vmul.f32 1.442695, %v269_v10 }
  0x3d   : > { %930 = vpow2.f32 %v393_v15  ;;  %v271_v20 = vmul.f32 0.5, %v143_v12  ;;  %v272_v21 = vmul.f32 0.5, %v144_v13  ;;  %v273_v22 = vmul.f32 0.5, %v145_v14  ;;  %v146_v23 = vld [vmem:[%s1410_s30 + $0x48] sm:$0xff]  ;;  %v147_v24 = vld [vmem:[%s1410_s30 + $0x50] sm:$0xff]  ;;  %v148_v25 = vld [vmem:[%s1410_s30 + $0x58] sm:$0xff] }
  0x3e   : > { %932 = vpow2.f32 %v395_v16  ;;  %v403_v26 = vmul.f32 1.442695, %v270_v11  ;;  %v274_v27 = vmul.f32 0.5, %v146_v23  ;;  %v149_v28 = vld [vmem:[%s1410_s30 + $0x60] sm:$0xff]  ;;  %v275_v30 = vmul.f32 0.5, %v147_v24  ;;  %v150_v31 = vld [vmem:[%s1410_s30 + $0x68] sm:$0xff] }
  0x3f   : > { %934 = vpow2.f32 %v397_v17  ;;  %v405_v29 = vmul.f32 1.442695, %v271_v20  ;;  %v407_v32 = vmul.f32 1.442695, %v272_v21  ;;  %v276_v33 = vmul.f32 0.5, %v148_v25  ;;  %v151_v34 = vld [vmem:[%s1410_s30 + $0x70] sm:$0xff] }
  0x40   : > { %936 = vpow2.f32 %v399_v18  ;;  %v409_v35 = vmul.f32 1.442695, %v273_v22  ;;  %v277_v36 = vmul.f32 0.5, %v149_v28  ;;  %v152_v37 = vld [vmem:[%s1410_s30 + $0x78] sm:$0xff]  ;;  %v411_v38 = vmul.f32 1.442695, %v274_v27 }
  0x41   : > { %938 = vpow2.f32 %v401_v19  ;;  %v278_v39 = vmul.f32 0.5, %v150_v31  ;;  %v153_v40 = vld [vmem:[%s1410_s30 + $0x80] sm:$0xff]  ;;  %v413_v41 = vmul.f32 1.442695, %v275_v30  ;;  %v279_v42 = vmul.f32 0.5, %v151_v34  ;;  %v154_v43 = vld [vmem:[%s1410_s30 + $0x88] sm:$0xff] }
  0x42   : > { %940 = vpow2.f32 %v403_v26  ;;  %v415_v44 = vmul.f32 1.442695, %v276_v33  ;;  %v280_v45 = vmul.f32 0.5, %v152_v37  ;;  %v155_v46 = vld [vmem:[%s1410_s30 + $0x90] sm:$0xff]  ;;  %v417_v47 = vmul.f32 1.442695, %v277_v36 }
  0x43   : > { %942 = vpow2.f32 %v405_v29  ;;  %v281_v48 = vmul.f32 0.5, %v153_v40  ;;  %v156_v49 = vld [vmem:[%s1410_s30 + $0x98] sm:$0xff]  ;;  %v419_v50 = vmul.f32 1.442695, %v278_v39  ;;  %v282_v51 = vmul.f32 0.5, %v154_v43  ;;  %v157_v52 = vld [vmem:[%s1410_s30 + $0xa0] sm:$0xff] }
  0x44   : > { %944 = vpow2.f32 %v407_v32  ;;  %v421_v54 = vmul.f32 1.442695, %v279_v42  ;;  %v283_v55 = vmul.f32 0.5, %v155_v46  ;;  %v158_v56 = vld [vmem:[%s1410_s30 + $0xa8] sm:$0xff]  ;;  %v423_v58 = vmul.f32 1.442695, %v280_v45 }
  0x45   : > { %946 = vpow2.f32 %v409_v35  ;;  %v284_v59 = vmul.f32 0.5, %v156_v49  ;;  %v159_v60 = vld [vmem:[%s1410_s30 + $0xb0] sm:$0xff]  ;;  %v425_v62 = vmul.f32 1.442695, %v281_v48  ;;  %v285_v63 = vmul.f32 0.5, %v157_v52  ;;  %v160_v0 = vld [vmem:[%s1410_s30 + $0xb8] sm:$0xff] }
  0x46   : > { %948 = vpow2.f32 %v411_v38  ;;  %v427_v2 = vmul.f32 1.442695, %v282_v51  ;;  %v286_v3 = vmul.f32 0.5, %v158_v56  ;;  %v161_v4 = vld [vmem:[%s1410_s30 + $0xc0] sm:$0xff]  ;;  %v429_v6 = vmul.f32 1.442695, %v283_v55 }
  0x47   : > { %v931_v53 = vpop.eup %930  ;;  %950 = vpow2.f32 %v413_v41  ;;  %v287_v7 = vmul.f32 0.5, %v159_v60  ;;  %v162_v8 = vld [vmem:[%s1410_s30 + $0xc8] sm:$0xff]  ;;  %v431_v10 = vmul.f32 1.442695, %v284_v59  ;;  %v288_v11 = vmul.f32 0.5, %v160_v0  ;;  %v163_v12 = vld [vmem:[%s1410_s30 + $0xd0] sm:$0xff] }
  0x48   : > { %v933_v57 = vpop.eup %932  ;;  %649 = vst [vmem:[%s1440_s17] sm:$0xff] %v931_v53  ;;  %952 = vpow2.f32 %v415_v44  ;;  %v433_v14 = vmul.f32 1.442695, %v285_v63  ;;  %v289_v15 = vmul.f32 0.5, %v161_v4  ;;  %v164_v16 = vld [vmem:[%s1410_s30 + $0xd8] sm:$0xff]  ;;  %v435_v18 = vmul.f32 1.442695, %v286_v3 }
  0x49   : > { %v935_v61 = vpop.eup %934  ;;  %650 = vst [vmem:[%s1440_s17 + $0x8] sm:$0xff] %v933_v57  ;;  %954 = vpow2.f32 %v417_v47  ;;  %v290_v19 = vmul.f32 0.5, %v162_v8  ;;  %v165_v20 = vld [vmem:[%s1410_s30 + $0xe0] sm:$0xff]  ;;  %v437_v22 = vmul.f32 1.442695, %v287_v7  ;;  %v291_v23 = vmul.f32 0.5, %v163_v12 }
  0x4a   : > { %v937_v1 = vpop.eup %936  ;;  %651 = vst [vmem:[%s1440_s17 + $0x10] sm:$0xff] %v935_v61  ;;  %956 = vpow2.f32 %v419_v50  ;;  %v166_v24 = vld [vmem:[%s1410_s30 + $0xe8] sm:$0xff]  ;;  %v439_v26 = vmul.f32 1.442695, %v288_v11  ;;  %v292_v27 = vmul.f32 0.5, %v164_v16  ;;  %v167_v28 = vld [vmem:[%s1410_s30 + $0xf0] sm:$0xff] }
  0x4b   : > { %v939_v5 = vpop.eup %938  ;;  %652 = vst [vmem:[%s1440_s17 + $0x18] sm:$0xff] %v937_v1  ;;  %958 = vpow2.f32 %v421_v54  ;;  %v441_v30 = vmul.f32 1.442695, %v289_v15  ;;  %v293_v31 = vmul.f32 0.5, %v165_v20  ;;  %v168_v32 = vld [vmem:[%s1410_s30 + $0xf8] sm:$0xff]  ;;  %v294_v35 = vmul.f32 0.5, %v166_v24 }
  0x4c   : > { %v941_v9 = vpop.eup %940  ;;  %653 = vst [vmem:[%s1440_s17 + $0x20] sm:$0xff] %v939_v5  ;;  %960 = vpow2.f32 %v423_v58  ;;  %v443_v34 = vmul.f32 1.442695, %v290_v19  ;;  %v169_v36 = vld [vmem:[%s1410_s30 + $0x100] sm:$0xff]  ;;  %v445_v38 = vmul.f32 1.442695, %v291_v23 }
  0x4d   : > { %v943_v13 = vpop.eup %942  ;;  %654 = vst [vmem:[%s1440_s17 + $0x28] sm:$0xff] %v941_v9  ;;  %962 = vpow2.f32 %v425_v62  ;;  %v295_v39 = vmul.f32 0.5, %v167_v28  ;;  %v170_v40 = vld [vmem:[%s1410_s30 + $0x108] sm:$0xff]  ;;  %v447_v42 = vmul.f32 1.442695, %v292_v27  ;;  %v296_v43 = vmul.f32 0.5, %v168_v32 }
  0x4e   : > { %v945_v17 = vpop.eup %944  ;;  %655 = vst [vmem:[%s1440_s17 + $0x30] sm:$0xff] %v943_v13  ;;  %964 = vpow2.f32 %v427_v2  ;;  %v171_v44 = vld [vmem:[%s1410_s30 + $0x110] sm:$0xff]  ;;  %v449_v46 = vmul.f32 1.442695, %v293_v31  ;;  %v297_v47 = vmul.f32 0.5, %v169_v36  ;;  %v172_v48 = vld [vmem:[%s1410_s30 + $0x118] sm:$0xff] }
  0x4f   : > { %v947_v21 = vpop.eup %946  ;;  %656 = vst [vmem:[%s1440_s17 + $0x38] sm:$0xff] %v945_v17  ;;  %966 = vpow2.f32 %v429_v6  ;;  %v451_v50 = vmul.f32 1.442695, %v294_v35  ;;  %v298_v51 = vmul.f32 0.5, %v170_v40  ;;  %v173_v52 = vld [vmem:[%s1410_s30 + $0x120] sm:$0xff]  ;;  %v299_v55 = vmul.f32 0.5, %v171_v44 }
  0x50   : > { %v949_v25 = vpop.eup %948  ;;  %657 = vst [vmem:[%s1440_s17 + $0x40] sm:$0xff] %v947_v21  ;;  %968 = vpow2.f32 %v431_v10  ;;  %v453_v54 = vmul.f32 1.442695, %v295_v39  ;;  %v174_v56 = vld [vmem:[%s1410_s30 + $0x128] sm:$0xff]  ;;  %v455_v58 = vmul.f32 1.442695, %v296_v43 }
  0x51   : > { %v951_v29 = vpop.eup %950  ;;  %658 = vst [vmem:[%s1440_s17 + $0x48] sm:$0xff] %v949_v25  ;;  %970 = vpow2.f32 %v433_v14  ;;  %v300_v59 = vmul.f32 0.5, %v172_v48  ;;  %v175_v60 = vld [vmem:[%s1410_s30 + $0x130] sm:$0xff]  ;;  %v457_v62 = vmul.f32 1.442695, %v297_v47  ;;  %v301_v63 = vmul.f32 0.5, %v173_v52 }
  0x52   : > { %v953_v33 = vpop.eup %952  ;;  %659 = vst [vmem:[%s1440_s17 + $0x50] sm:$0xff] %v951_v29  ;;  %972 = vpow2.f32 %v435_v18  ;;  %v176_v0 = vld [vmem:[%s1410_s30 + $0x138] sm:$0xff]  ;;  %v459_v2 = vmul.f32 1.442695, %v298_v51  ;;  %v302_v3 = vmul.f32 0.5, %v174_v56  ;;  %v177_v4 = vld [vmem:[%s1410_s30 + $0x140] sm:$0xff] }
  0x53   : > { %v955_v37 = vpop.eup %954  ;;  %660 = vst [vmem:[%s1440_s17 + $0x58] sm:$0xff] %v953_v33  ;;  %974 = vpow2.f32 %v437_v22  ;;  %v461_v6 = vmul.f32 1.442695, %v299_v55  ;;  %v303_v7 = vmul.f32 0.5, %v175_v60  ;;  %v178_v8 = vld [vmem:[%s1410_s30 + $0x148] sm:$0xff]  ;;  %v304_v11 = vmul.f32 0.5, %v176_v0 }
  0x54   : > { %v957_v41 = vpop.eup %956  ;;  %661 = vst [vmem:[%s1440_s17 + $0x60] sm:$0xff] %v955_v37  ;;  %976 = vpow2.f32 %v439_v26  ;;  %v463_v10 = vmul.f32 1.442695, %v300_v59  ;;  %v179_v12 = vld [vmem:[%s1410_s30 + $0x150] sm:$0xff]  ;;  %v465_v14 = vmul.f32 1.442695, %v301_v63 }
  0x55   : > { %v959_v45 = vpop.eup %958  ;;  %662 = vst [vmem:[%s1440_s17 + $0x68] sm:$0xff] %v957_v41  ;;  %978 = vpow2.f32 %v441_v30  ;;  %v305_v15 = vmul.f32 0.5, %v177_v4  ;;  %v180_v16 = vld [vmem:[%s1410_s30 + $0x158] sm:$0xff]  ;;  %v467_v18 = vmul.f32 1.442695, %v302_v3  ;;  %v306_v19 = vmul.f32 0.5, %v178_v8 }
  0x56   : > { %v961_v49 = vpop.eup %960  ;;  %663 = vst [vmem:[%s1440_s17 + $0x70] sm:$0xff] %v959_v45  ;;  %980 = vpow2.f32 %v443_v34  ;;  %v181_v20 = vld [vmem:[%s1410_s30 + $0x160] sm:$0xff]  ;;  %v469_v22 = vmul.f32 1.442695, %v303_v7  ;;  %v307_v23 = vmul.f32 0.5, %v179_v12  ;;  %v182_v24 = vld [vmem:[%s1410_s30 + $0x168] sm:$0xff] }
  0x57   : > { %v963_v53 = vpop.eup %962  ;;  %664 = vst [vmem:[%s1440_s17 + $0x78] sm:$0xff] %v961_v49  ;;  %982 = vpow2.f32 %v445_v38  ;;  %v471_v26 = vmul.f32 1.442695, %v304_v11  ;;  %v308_v27 = vmul.f32 0.5, %v180_v16  ;;  %v183_v28 = vld [vmem:[%s1410_s30 + $0x170] sm:$0xff]  ;;  %v309_v31 = vmul.f32 0.5, %v181_v20 }
  0x58   : > { %v965_v57 = vpop.eup %964  ;;  %665 = vst [vmem:[%s1440_s17 + $0x80] sm:$0xff] %v963_v53  ;;  %984 = vpow2.f32 %v447_v42  ;;  %v473_v30 = vmul.f32 1.442695, %v305_v15  ;;  %v184_v32 = vld [vmem:[%s1410_s30 + $0x178] sm:$0xff]  ;;  %v475_v34 = vmul.f32 1.442695, %v306_v19 }
  0x59   : > { %v967_v61 = vpop.eup %966  ;;  %666 = vst [vmem:[%s1440_s17 + $0x88] sm:$0xff] %v965_v57  ;;  %986 = vpow2.f32 %v449_v46  ;;  %v310_v35 = vmul.f32 0.5, %v182_v24  ;;  %v185_v36 = vld [vmem:[%s1410_s30 + $0x180] sm:$0xff]  ;;  %v477_v38 = vmul.f32 1.442695, %v307_v23  ;;  %v311_v39 = vmul.f32 0.5, %v183_v28 }
  0x5a   : > { %v969_v1 = vpop.eup %968  ;;  %667 = vst [vmem:[%s1440_s17 + $0x90] sm:$0xff] %v967_v61  ;;  %988 = vpow2.f32 %v451_v50  ;;  %v186_v40 = vld [vmem:[%s1410_s30 + $0x188] sm:$0xff]  ;;  %v479_v42 = vmul.f32 1.442695, %v308_v27  ;;  %v312_v43 = vmul.f32 0.5, %v184_v32  ;;  %v187_v44 = vld [vmem:[%s1410_s30 + $0x190] sm:$0xff] }
  0x5b   : > { %v971_v5 = vpop.eup %970  ;;  %668 = vst [vmem:[%s1440_s17 + $0x98] sm:$0xff] %v969_v1  ;;  %990 = vpow2.f32 %v453_v54  ;;  %v481_v46 = vmul.f32 1.442695, %v309_v31  ;;  %v313_v47 = vmul.f32 0.5, %v185_v36  ;;  %v188_v48 = vld [vmem:[%s1410_s30 + $0x198] sm:$0xff]  ;;  %v314_v51 = vmul.f32 0.5, %v186_v40 }
  0x5c   : > { %v973_v9 = vpop.eup %972  ;;  %669 = vst [vmem:[%s1440_s17 + $0xa0] sm:$0xff] %v971_v5  ;;  %992 = vpow2.f32 %v455_v58  ;;  %v483_v50 = vmul.f32 1.442695, %v310_v35  ;;  %v189_v52 = vld [vmem:[%s1410_s30 + $0x1a0] sm:$0xff]  ;;  %v485_v54 = vmul.f32 1.442695, %v311_v39 }
  0x5d   : > { %v975_v13 = vpop.eup %974  ;;  %670 = vst [vmem:[%s1440_s17 + $0xa8] sm:$0xff] %v973_v9  ;;  %994 = vpow2.f32 %v457_v62  ;;  %v315_v55 = vmul.f32 0.5, %v187_v44  ;;  %v190_v56 = vld [vmem:[%s1410_s30 + $0x1a8] sm:$0xff]  ;;  %v487_v58 = vmul.f32 1.442695, %v312_v43  ;;  %v316_v59 = vmul.f32 0.5, %v188_v48 }
  0x5e   : > { %v977_v17 = vpop.eup %976  ;;  %671 = vst [vmem:[%s1440_s17 + $0xb0] sm:$0xff] %v975_v13  ;;  %996 = vpow2.f32 %v459_v2  ;;  %v191_v60 = vld [vmem:[%s1410_s30 + $0x1b0] sm:$0xff]  ;;  %v489_v62 = vmul.f32 1.442695, %v313_v47  ;;  %v317_v63 = vmul.f32 0.5, %v189_v52  ;;  %v192_v0 = vld [vmem:[%s1410_s30 + $0x1b8] sm:$0xff] }
  0x5f   : > { %v979_v21 = vpop.eup %978  ;;  %672 = vst [vmem:[%s1440_s17 + $0xb8] sm:$0xff] %v977_v17  ;;  %998 = vpow2.f32 %v461_v6  ;;  %v491_v2 = vmul.f32 1.442695, %v314_v51  ;;  %v318_v3 = vmul.f32 0.5, %v190_v56  ;;  %v193_v4 = vld [vmem:[%s1410_s30 + $0x1c0] sm:$0xff]  ;;  %v319_v7 = vmul.f32 0.5, %v191_v60 }
  0x60   : > { %v981_v25 = vpop.eup %980  ;;  %673 = vst [vmem:[%s1440_s17 + $0xc0] sm:$0xff] %v979_v21  ;;  %1000 = vpow2.f32 %v463_v10  ;;  %v493_v6 = vmul.f32 1.442695, %v315_v55  ;;  %v194_v8 = vld [vmem:[%s1410_s30 + $0x1c8] sm:$0xff]  ;;  %v495_v10 = vmul.f32 1.442695, %v316_v59 }
  0x61   : > { %v983_v29 = vpop.eup %982  ;;  %674 = vst [vmem:[%s1440_s17 + $0xc8] sm:$0xff] %v981_v25  ;;  %1002 = vpow2.f32 %v465_v14  ;;  %v320_v11 = vmul.f32 0.5, %v192_v0  ;;  %v195_v12 = vld [vmem:[%s1410_s30 + $0x1d0] sm:$0xff]  ;;  %v497_v14 = vmul.f32 1.442695, %v317_v63  ;;  %v321_v15 = vmul.f32 0.5, %v193_v4 }
  0x62   : > { %v985_v33 = vpop.eup %984  ;;  %675 = vst [vmem:[%s1440_s17 + $0xd0] sm:$0xff] %v983_v29  ;;  %1004 = vpow2.f32 %v467_v18  ;;  %v196_v16 = vld [vmem:[%s1410_s30 + $0x1d8] sm:$0xff]  ;;  %v499_v18 = vmul.f32 1.442695, %v318_v3  ;;  %v322_v19 = vmul.f32 0.5, %v194_v8  ;;  %v197_v20 = vld [vmem:[%s1410_s30 + $0x1e0] sm:$0xff] }
  0x63   : > { %v987_v37 = vpop.eup %986  ;;  %676 = vst [vmem:[%s1440_s17 + $0xd8] sm:$0xff] %v985_v33  ;;  %1006 = vpow2.f32 %v469_v22  ;;  %v501_v22 = vmul.f32 1.442695, %v319_v7  ;;  %v323_v23 = vmul.f32 0.5, %v195_v12  ;;  %v198_v24 = vld [vmem:[%s1410_s30 + $0x1e8] sm:$0xff]  ;;  %v324_v27 = vmul.f32 0.5, %v196_v16 }
  0x64   : > { %v989_v41 = vpop.eup %988  ;;  %677 = vst [vmem:[%s1440_s17 + $0xe0] sm:$0xff] %v987_v37  ;;  %1008 = vpow2.f32 %v471_v26  ;;  %v503_v26 = vmul.f32 1.442695, %v320_v11  ;;  %v199_v28 = vld [vmem:[%s1410_s30 + $0x1f0] sm:$0xff]  ;;  %v325_v31 = vmul.f32 0.5, %v197_v20  ;;  %v200_v32 = vld [vmem:[%s1410_s30 + $0x1f8] sm:$0xff] }
  0x65   : > { %v991_v45 = vpop.eup %990  ;;  %678 = vst [vmem:[%s1440_s17 + $0xe8] sm:$0xff] %v989_v41  ;;  %1010 = vpow2.f32 %v473_v30  ;;  %v505_v30 = vmul.f32 1.442695, %v321_v15  ;;  %v326_v35 = vmul.f32 0.5, %v198_v24  ;;  %v201_v36 = vld [vmem:[%s1410_s30 + $0x200] sm:$0xff]  ;;  %v327_v39 = vmul.f32 0.5, %v199_v28 }
  0x66   : > { %v993_v49 = vpop.eup %992  ;;  %679 = vst [vmem:[%s1440_s17 + $0xf0] sm:$0xff] %v991_v45  ;;  %1012 = vpow2.f32 %v475_v34  ;;  %v507_v34 = vmul.f32 1.442695, %v322_v19  ;;  %v202_v40 = vld [vmem:[%s1410_s30 + $0x208] sm:$0xff]  ;;  %v328_v43 = vmul.f32 0.5, %v200_v32  ;;  %v203_v44 = vld [vmem:[%s1410_s30 + $0x210] sm:$0xff] }
  0x67   : > { %v995_v53 = vpop.eup %994  ;;  %680 = vst [vmem:[%s1440_s17 + $0xf8] sm:$0xff] %v993_v49  ;;  %1014 = vpow2.f32 %v477_v38  ;;  %v509_v38 = vmul.f32 1.442695, %v323_v23  ;;  %v329_v47 = vmul.f32 0.5, %v201_v36  ;;  %v204_v48 = vld [vmem:[%s1410_s30 + $0x218] sm:$0xff]  ;;  %v330_v51 = vmul.f32 0.5, %v202_v40 }
  0x68   : > { %v997_v57 = vpop.eup %996  ;;  %681 = vst [vmem:[%s1440_s17 + $0x100] sm:$0xff] %v995_v53  ;;  %1016 = vpow2.f32 %v479_v42  ;;  %v511_v42 = vmul.f32 1.442695, %v324_v27  ;;  %v205_v52 = vld [vmem:[%s1410_s30 + $0x220] sm:$0xff]  ;;  %v331_v55 = vmul.f32 0.5, %v203_v44  ;;  %v206_v56 = vld [vmem:[%s1410_s30 + $0x228] sm:$0xff] }
  0x69   : > { %v999_v61 = vpop.eup %998  ;;  %682 = vst [vmem:[%s1440_s17 + $0x108] sm:$0xff] %v997_v57  ;;  %1018 = vpow2.f32 %v481_v46  ;;  %v513_v46 = vmul.f32 1.442695, %v325_v31  ;;  %v332_v59 = vmul.f32 0.5, %v204_v48  ;;  %v207_v60 = vld [vmem:[%s1410_s30 + $0x230] sm:$0xff]  ;;  %v333_v63 = vmul.f32 0.5, %v205_v52 }
  0x6a   : > { %v1001_v1 = vpop.eup %1000  ;;  %683 = vst [vmem:[%s1440_s17 + $0x110] sm:$0xff] %v999_v61  ;;  %1020 = vpow2.f32 %v483_v50  ;;  %v515_v50 = vmul.f32 1.442695, %v326_v35  ;;  %v208_v0 = vld [vmem:[%s1410_s30 + $0x238] sm:$0xff]  ;;  %v334_v3 = vmul.f32 0.5, %v206_v56  ;;  %v209_v4 = vld [vmem:[%s1410_s30 + $0x240] sm:$0xff] }
  0x6b   : > { %v1003_v5 = vpop.eup %1002  ;;  %684 = vst [vmem:[%s1440_s17 + $0x118] sm:$0xff] %v1001_v1  ;;  %1022 = vpow2.f32 %v485_v54  ;;  %v517_v54 = vmul.f32 1.442695, %v327_v39  ;;  %v335_v7 = vmul.f32 0.5, %v207_v60  ;;  %v210_v8 = vld [vmem:[%s1410_s30 + $0x248] sm:$0xff]  ;;  %v336_v11 = vmul.f32 0.5, %v208_v0 }
  0x6c   : > { %v1005_v9 = vpop.eup %1004  ;;  %685 = vst [vmem:[%s1440_s17 + $0x120] sm:$0xff] %v1003_v5  ;;  %1024 = vpow2.f32 %v487_v58  ;;  %v519_v58 = vmul.f32 1.442695, %v328_v43  ;;  %v211_v12 = vld [vmem:[%s1410_s30 + $0x250] sm:$0xff]  ;;  %v337_v15 = vmul.f32 0.5, %v209_v4  ;;  %v212_v16 = vld [vmem:[%s1410_s30 + $0x258] sm:$0xff] }
  0x6d   : > { %v1007_v13 = vpop.eup %1006  ;;  %686 = vst [vmem:[%s1440_s17 + $0x128] sm:$0xff] %v1005_v9  ;;  %1026 = vpow2.f32 %v489_v62  ;;  %v521_v62 = vmul.f32 1.442695, %v329_v47  ;;  %v338_v19 = vmul.f32 0.5, %v210_v8  ;;  %v213_v20 = vld [vmem:[%s1410_s30 + $0x260] sm:$0xff]  ;;  %v339_v23 = vmul.f32 0.5, %v211_v12 }
  0x6e   : > { %v1009_v17 = vpop.eup %1008  ;;  %687 = vst [vmem:[%s1440_s17 + $0x130] sm:$0xff] %v1007_v13  ;;  %1028 = vpow2.f32 %v491_v2  ;;  %v523_v2 = vmul.f32 1.442695, %v330_v51  ;;  %v214_v24 = vld [vmem:[%s1410_s30 + $0x268] sm:$0xff]  ;;  %v340_v27 = vmul.f32 0.5, %v212_v16  ;;  %v215_v28 = vld [vmem:[%s1410_s30 + $0x270] sm:$0xff] }
  0x6f   : > { %v1011_v21 = vpop.eup %1010  ;;  %688 = vst [vmem:[%s1440_s17 + $0x138] sm:$0xff] %v1009_v17  ;;  %1030 = vpow2.f32 %v493_v6  ;;  %v525_v6 = vmul.f32 1.442695, %v331_v55  ;;  %v341_v31 = vmul.f32 0.5, %v213_v20  ;;  %v216_v32 = vld [vmem:[%s1410_s30 + $0x278] sm:$0xff]  ;;  %v342_v35 = vmul.f32 0.5, %v214_v24 }
  0x70   : > { %v1013_v25 = vpop.eup %1012  ;;  %689 = vst [vmem:[%s1440_s17 + $0x140] sm:$0xff] %v1011_v21  ;;  %1032 = vpow2.f32 %v495_v10  ;;  %v527_v10 = vmul.f32 1.442695, %v332_v59  ;;  %v217_v36 = vld [vmem:[%s1410_s30 + $0x280] sm:$0xff]  ;;  %v343_v39 = vmul.f32 0.5, %v215_v28  ;;  %v218_v40 = vld [vmem:[%s1410_s30 + $0x288] sm:$0xff] }
  0x71   : > { %v1015_v29 = vpop.eup %1014  ;;  %690 = vst [vmem:[%s1440_s17 + $0x148] sm:$0xff] %v1013_v25  ;;  %1034 = vpow2.f32 %v497_v14  ;;  %v529_v14 = vmul.f32 1.442695, %v333_v63  ;;  %v344_v43 = vmul.f32 0.5, %v216_v32  ;;  %v219_v44 = vld [vmem:[%s1410_s30 + $0x290] sm:$0xff]  ;;  %v345_v47 = vmul.f32 0.5, %v217_v36 }
  0x72   : > { %v1017_v33 = vpop.eup %1016  ;;  %691 = vst [vmem:[%s1440_s17 + $0x150] sm:$0xff] %v1015_v29  ;;  %1036 = vpow2.f32 %v499_v18  ;;  %v531_v18 = vmul.f32 1.442695, %v334_v3  ;;  %v220_v48 = vld [vmem:[%s1410_s30 + $0x298] sm:$0xff]  ;;  %v346_v51 = vmul.f32 0.5, %v218_v40  ;;  %v221_v52 = vld [vmem:[%s1410_s30 + $0x2a0] sm:$0xff] }
  0x73   : > { %v1019_v37 = vpop.eup %1018  ;;  %692 = vst [vmem:[%s1440_s17 + $0x158] sm:$0xff] %v1017_v33  ;;  %1038 = vpow2.f32 %v501_v22  ;;  %v533_v22 = vmul.f32 1.442695, %v335_v7  ;;  %v347_v55 = vmul.f32 0.5, %v219_v44  ;;  %v222_v56 = vld [vmem:[%s1410_s30 + $0x2a8] sm:$0xff]  ;;  %v348_v59 = vmul.f32 0.5, %v220_v48 }
  0x74   : > { %v1021_v41 = vpop.eup %1020  ;;  %693 = vst [vmem:[%s1440_s17 + $0x160] sm:$0xff] %v1019_v37  ;;  %1040 = vpow2.f32 %v503_v26  ;;  %v535_v26 = vmul.f32 1.442695, %v336_v11  ;;  %v223_v60 = vld [vmem:[%s1410_s30 + $0x2b0] sm:$0xff]  ;;  %v349_v63 = vmul.f32 0.5, %v221_v52  ;;  %v224_v0 = vld [vmem:[%s1410_s30 + $0x2b8] sm:$0xff] }
  0x75   : > { %v1023_v45 = vpop.eup %1022  ;;  %694 = vst [vmem:[%s1440_s17 + $0x168] sm:$0xff] %v1021_v41  ;;  %1042 = vpow2.f32 %v505_v30  ;;  %v537_v30 = vmul.f32 1.442695, %v337_v15  ;;  %v350_v3 = vmul.f32 0.5, %v222_v56  ;;  %v225_v4 = vld [vmem:[%s1410_s30 + $0x2c0] sm:$0xff]  ;;  %v351_v7 = vmul.f32 0.5, %v223_v60 }
  0x76   : > { %v1025_v49 = vpop.eup %1024  ;;  %695 = vst [vmem:[%s1440_s17 + $0x170] sm:$0xff] %v1023_v45  ;;  %1044 = vpow2.f32 %v507_v34  ;;  %v539_v34 = vmul.f32 1.442695, %v338_v19  ;;  %v226_v8 = vld [vmem:[%s1410_s30 + $0x2c8] sm:$0xff]  ;;  %v352_v11 = vmul.f32 0.5, %v224_v0  ;;  %v227_v12 = vld [vmem:[%s1410_s30 + $0x2d0] sm:$0xff] }
  0x77   : > { %v1027_v53 = vpop.eup %1026  ;;  %696 = vst [vmem:[%s1440_s17 + $0x178] sm:$0xff] %v1025_v49  ;;  %1046 = vpow2.f32 %v509_v38  ;;  %v541_v38 = vmul.f32 1.442695, %v339_v23  ;;  %v353_v15 = vmul.f32 0.5, %v225_v4  ;;  %v228_v16 = vld [vmem:[%s1410_s30 + $0x2d8] sm:$0xff]  ;;  %v354_v19 = vmul.f32 0.5, %v226_v8 }
  0x78   : > { %v1029_v57 = vpop.eup %1028  ;;  %697 = vst [vmem:[%s1440_s17 + $0x180] sm:$0xff] %v1027_v53  ;;  %1048 = vpow2.f32 %v511_v42  ;;  %v543_v42 = vmul.f32 1.442695, %v340_v27  ;;  %v229_v20 = vld [vmem:[%s1410_s30 + $0x2e0] sm:$0xff]  ;;  %v355_v23 = vmul.f32 0.5, %v227_v12  ;;  %v230_v24 = vld [vmem:[%s1410_s30 + $0x2e8] sm:$0xff] }
  0x79   : > { %v1031_v61 = vpop.eup %1030  ;;  %698 = vst [vmem:[%s1440_s17 + $0x188] sm:$0xff] %v1029_v57  ;;  %1050 = vpow2.f32 %v513_v46  ;;  %v545_v46 = vmul.f32 1.442695, %v341_v31  ;;  %v356_v27 = vmul.f32 0.5, %v228_v16  ;;  %v231_v28 = vld [vmem:[%s1410_s30 + $0x2f0] sm:$0xff]  ;;  %v357_v31 = vmul.f32 0.5, %v229_v20 }
  0x7a   : > { %v1033_v1 = vpop.eup %1032  ;;  %699 = vst [vmem:[%s1440_s17 + $0x190] sm:$0xff] %v1031_v61  ;;  %1052 = vpow2.f32 %v515_v50  ;;  %v547_v50 = vmul.f32 1.442695, %v342_v35  ;;  %v232_v32 = vld [vmem:[%s1410_s30 + $0x2f8] sm:$0xff]  ;;  %v358_v35 = vmul.f32 0.5, %v230_v24  ;;  %v233_v36 = vld [vmem:[%s1410_s30 + $0x300] sm:$0xff] }
  0x7b   : > { %v1035_v5 = vpop.eup %1034  ;;  %700 = vst [vmem:[%s1440_s17 + $0x198] sm:$0xff] %v1033_v1  ;;  %1054 = vpow2.f32 %v517_v54  ;;  %v549_v54 = vmul.f32 1.442695, %v343_v39  ;;  %v359_v39 = vmul.f32 0.5, %v231_v28  ;;  %v234_v40 = vld [vmem:[%s1410_s30 + $0x308] sm:$0xff]  ;;  %v235_v44 = vld [vmem:[%s1410_s30 + $0x310] sm:$0xff] }
  0x7c   : > { %v1037_v9 = vpop.eup %1036  ;;  %701 = vst [vmem:[%s1440_s17 + $0x1a0] sm:$0xff] %v1035_v5  ;;  %1056 = vpow2.f32 %v519_v58  ;;  %v551_v58 = vmul.f32 1.442695, %v344_v43  ;;  %v360_v43 = vmul.f32 0.5, %v232_v32  ;;  %v236_v48 = vld [vmem:[%s1410_s30 + $0x318] sm:$0xff]  ;;  %v237_v52 = vld [vmem:[%s1410_s30 + $0x320] sm:$0xff] }
  0x7d   : > { %v1039_v13 = vpop.eup %1038  ;;  %702 = vst [vmem:[%s1440_s17 + $0x1a8] sm:$0xff] %v1037_v9  ;;  %1058 = vpow2.f32 %v521_v62  ;;  %v553_v62 = vmul.f32 1.442695, %v345_v47  ;;  %v361_v47 = vmul.f32 0.5, %v233_v36  ;;  %v238_v56 = vld [vmem:[%s1410_s30 + $0x328] sm:$0xff]  ;;  %v239_v60 = vld [vmem:[%s1410_s30 + $0x330] sm:$0xff] }
  0x7e   : > { %v1041_v17 = vpop.eup %1040  ;;  %703 = vst [vmem:[%s1440_s17 + $0x1b0] sm:$0xff] %v1039_v13  ;;  %1060 = vpow2.f32 %v523_v2  ;;  %v555_v2 = vmul.f32 1.442695, %v346_v51  ;;  %v362_v51 = vmul.f32 0.5, %v234_v40  ;;  %v240_v0 = vld [vmem:[%s1410_s30 + $0x338] sm:$0xff]  ;;  %v241_v4 = vld [vmem:[%s1410_s30 + $0x340] sm:$0xff] }
  0x7f   : > { %v1043_v21 = vpop.eup %1042  ;;  %704 = vst [vmem:[%s1440_s17 + $0x1b8] sm:$0xff] %v1041_v17  ;;  %1062 = vpow2.f32 %v525_v6  ;;  %v557_v6 = vmul.f32 1.442695, %v347_v55  ;;  %v363_v55 = vmul.f32 0.5, %v235_v44  ;;  %v242_v8 = vld [vmem:[%s1410_s30 + $0x348] sm:$0xff]  ;;  %v243_v12 = vld [vmem:[%s1410_s30 + $0x350] sm:$0xff] }
  0x80   : > { %v1045_v25 = vpop.eup %1044  ;;  %705 = vst [vmem:[%s1440_s17 + $0x1c0] sm:$0xff] %v1043_v21  ;;  %1064 = vpow2.f32 %v527_v10  ;;  %v559_v10 = vmul.f32 1.442695, %v348_v59  ;;  %v364_v59 = vmul.f32 0.5, %v236_v48  ;;  %v244_v16 = vld [vmem:[%s1410_s30 + $0x358] sm:$0xff]  ;;  %v245_v20 = vld [vmem:[%s1410_s30 + $0x360] sm:$0xff] }
  0x81   : > { %v1047_v29 = vpop.eup %1046  ;;  %706 = vst [vmem:[%s1440_s17 + $0x1c8] sm:$0xff] %v1045_v25  ;;  %1066 = vpow2.f32 %v529_v14  ;;  %v561_v14 = vmul.f32 1.442695, %v349_v63  ;;  %v365_v63 = vmul.f32 0.5, %v237_v52  ;;  %v246_v24 = vld [vmem:[%s1410_s30 + $0x368] sm:$0xff]  ;;  %v247_v28 = vld [vmem:[%s1410_s30 + $0x370] sm:$0xff] }
  0x82   : > { %v1049_v33 = vpop.eup %1048  ;;  %707 = vst [vmem:[%s1440_s17 + $0x1d0] sm:$0xff] %v1047_v29  ;;  %1068 = vpow2.f32 %v531_v18  ;;  %v563_v18 = vmul.f32 1.442695, %v350_v3  ;;  %v366_v3 = vmul.f32 0.5, %v238_v56  ;;  %v248_v32 = vld [vmem:[%s1410_s30 + $0x378] sm:$0xff]  ;;  %v249_v36 = vld [vmem:[%s1410_s30 + $0x380] sm:$0xff] }
  0x83   : > { %v1051_v37 = vpop.eup %1050  ;;  %708 = vst [vmem:[%s1440_s17 + $0x1d8] sm:$0xff] %v1049_v33  ;;  %1070 = vpow2.f32 %v533_v22  ;;  %v565_v22 = vmul.f32 1.442695, %v351_v7  ;;  %v367_v7 = vmul.f32 0.5, %v239_v60  ;;  %v250_v40 = vld [vmem:[%s1410_s30 + $0x388] sm:$0xff]  ;;  %v251_v44 = vld [vmem:[%s1410_s30 + $0x390] sm:$0xff] }
  0x84   : > { %v1053_v41 = vpop.eup %1052  ;;  %709 = vst [vmem:[%s1440_s17 + $0x1e0] sm:$0xff] %v1051_v37  ;;  %1072 = vpow2.f32 %v535_v26  ;;  %v567_v26 = vmul.f32 1.442695, %v352_v11  ;;  %v368_v11 = vmul.f32 0.5, %v240_v0  ;;  %v252_v48 = vld [vmem:[%s1410_s30 + $0x398] sm:$0xff]  ;;  %v253_v52 = vld [vmem:[%s1410_s30 + $0x3a0] sm:$0xff] }
  0x85   : > { %v1055_v45 = vpop.eup %1054  ;;  %710 = vst [vmem:[%s1440_s17 + $0x1e8] sm:$0xff] %v1053_v41  ;;  %1074 = vpow2.f32 %v537_v30  ;;  %v569_v30 = vmul.f32 1.442695, %v353_v15  ;;  %v369_v15 = vmul.f32 0.5, %v241_v4  ;;  %v254_v56 = vld [vmem:[%s1410_s30 + $0x3a8] sm:$0xff]  ;;  %v255_v60 = vld [vmem:[%s1410_s30 + $0x3b0] sm:$0xff] }
  0x86   : > { %v1057_v49 = vpop.eup %1056  ;;  %711 = vst [vmem:[%s1440_s17 + $0x1f0] sm:$0xff] %v1055_v45  ;;  %1076 = vpow2.f32 %v539_v34  ;;  %v571_v34 = vmul.f32 1.442695, %v354_v19  ;;  %v370_v19 = vmul.f32 0.5, %v242_v8  ;;  %v256_v0 = vld [vmem:[%s1410_s30 + $0x3b8] sm:$0xff]  ;;  %v257_v4 = vld [vmem:[%s1410_s30 + $0x3c0] sm:$0xff] }
  0x87   : > { %v1059_v53 = vpop.eup %1058  ;;  %712 = vst [vmem:[%s1440_s17 + $0x1f8] sm:$0xff] %v1057_v49  ;;  %1078 = vpow2.f32 %v541_v38  ;;  %v573_v38 = vmul.f32 1.442695, %v355_v23  ;;  %v371_v23 = vmul.f32 0.5, %v243_v12  ;;  %v258_v8 = vld [vmem:[%s1410_s30 + $0x3c8] sm:$0xff]  ;;  %v259_v12 = vld [vmem:[%s1410_s30 + $0x3d0] sm:$0xff] }
  0x88   : > { %v1061_v57 = vpop.eup %1060  ;;  %713 = vst [vmem:[%s1440_s17 + $0x200] sm:$0xff] %v1059_v53  ;;  %1080 = vpow2.f32 %v543_v42  ;;  %v575_v42 = vmul.f32 1.442695, %v356_v27  ;;  %v372_v27 = vmul.f32 0.5, %v244_v16  ;;  %v260_v16 = vld [vmem:[%s1410_s30 + $0x3d8] sm:$0xff]  ;;  %s778_s10 = scalar_lea.sflag [#allocation4], %s1404_s23 }
  0x89   : > { %v1063_v61 = vpop.eup %1062  ;;  %714 = vst [vmem:[%s1440_s17 + $0x208] sm:$0xff] %v1061_v57  ;;  %1082 = vpow2.f32 %v545_v46  ;;  %v577_v46 = vmul.f32 1.442695, %v357_v31  ;;  %v373_v31 = vmul.f32 0.5, %v245_v20  ;;  %v261_v20 = vld [vmem:[%s1410_s30 + $0x3e0] sm:$0xff]  ;;  %s1216_s3 = scalar_lea.vmem %s1680_s27, 16384 }
  0x8a   : > { %v1065_v1 = vpop.eup %1064  ;;  %715 = vst [vmem:[%s1440_s17 + $0x210] sm:$0xff] %v1063_v61  ;;  %1084 = vpow2.f32 %v547_v50  ;;  %v579_v50 = vmul.f32 1.442695, %v358_v35  ;;  %v374_v35 = vmul.f32 0.5, %v246_v24  ;;  %v262_v24 = vld [vmem:[%s1410_s30 + $0x3e8] sm:$0xff]  ;;  %p1217_p6 = scmp.ne.s32.totalorder %s1680_s27, %s1216_s3  ;;  %p1735_p11 = scmp.ne.s32.totalorder %s1732_s18, 0 }
  0x8b   : > { %v1067_v5 = vpop.eup %1066  ;;  %716 = vst [vmem:[%s1440_s17 + $0x218] sm:$0xff] %v1065_v1  ;;  %1086 = vpow2.f32 %v549_v54  ;;  %v581_v54 = vmul.f32 1.442695, %v359_v39  ;;  %v375_v39 = vmul.f32 0.5, %v247_v28  ;;  %v263_v28 = vld [vmem:[%s1410_s30 + $0x3f0] sm:$0xff]  ;;  %s1287_s4 = smov [#allocation5]  }
  0x8c   : > { %v1069_v9 = vpop.eup %1068  ;;  %717 = vst [vmem:[%s1440_s17 + $0x220] sm:$0xff] %v1067_v5  ;;  %1088 = vpow2.f32 %v551_v58  ;;  %v583_v58 = vmul.f32 1.442695, %v360_v43  ;;  %v376_v43 = vmul.f32 0.5, %v248_v32  ;;  %v264_v32 = vld [vmem:[%s1410_s30 + $0x3f8] sm:$0xff]  ;;  %p1218_p12 = pnand %p1217_p6, %p1735_p11  ;;  %s1220_s5 = sshll.u32 %s1287_s4, 4  ;;  %s1221_s5 = int_to_ptr.vmem [resolvable:$false] %s1220_s5 }
  0x8d   : > { %v1071_v13 = vpop.eup %1070  ;;  %718 = vst [vmem:[%s1440_s17 + $0x228] sm:$0xff] %v1069_v9  ;;  %1090 = vpow2.f32 %v553_v62  ;;  %v585_v62 = vmul.f32 1.442695, %v361_v47  ;;  %v377_v47 = vmul.f32 0.5, %v249_v36  ;;  %s1222_s11 = scalar_lea.vmem %s1221_s5, 32768  ;;  %p1223_p8 = scmp.lt.s32.totalorder %s1680_s27, %s1221_s5 }
  0x8e   : > { %v1073_v17 = vpop.eup %1072  ;;  %719 = vst [vmem:[%s1440_s17 + $0x230] sm:$0xff] %v1071_v13  ;;  %1092 = vpow2.f32 %v555_v2  ;;  %v587_v2 = vmul.f32 1.442695, %v362_v51  ;;  %v378_v51 = vmul.f32 0.5, %v250_v40  ;;  %p1219_p13 = pneg %p1218_p12  ;;  %p1224_p10 = scmp.lt.s32.totalorder %s1222_s11, %s1216_s3 }
  0x8f   : > { %v1075_v21 = vpop.eup %1074  ;;  %720 = vst [vmem:[%s1440_s17 + $0x238] sm:$0xff] %v1073_v17  ;;  %1094 = vpow2.f32 %v557_v6  ;;  %v589_v6 = vmul.f32 1.442695, %v363_v55  ;;  %v379_v55 = vmul.f32 0.5, %v251_v44 }
  0x90   : > { %v1077_v25 = vpop.eup %1076  ;;  %721 = vst [vmem:[%s1440_s17 + $0x240] sm:$0xff] %v1075_v21  ;;  %1096 = vpow2.f32 %v559_v10  ;;  %v591_v10 = vmul.f32 1.442695, %v364_v59  ;;  %v380_v59 = vmul.f32 0.5, %v252_v48  ;;  %p1225_p0 = por %p1224_p10, %p1223_p8 }
  0x91   : > { %v1079_v29 = vpop.eup %1078  ;;  %722 = vst [vmem:[%s1440_s17 + $0x248] sm:$0xff] %v1077_v25  ;;  %1098 = vpow2.f32 %v561_v14  ;;  %v593_v14 = vmul.f32 1.442695, %v365_v63  ;;  %v381_v63 = vmul.f32 0.5, %v253_v52 }
  0x92   : > { %v1081_v33 = vpop.eup %1080  ;;  %723 = vst [vmem:[%s1440_s17 + $0x250] sm:$0xff] %v1079_v29  ;;  %1100 = vpow2.f32 %v563_v18  ;;  %v595_v18 = vmul.f32 1.442695, %v366_v3  ;;  %v382_v3 = vmul.f32 0.5, %v254_v56  ;;  %p1226_p2 = pnand %p1225_p0, %p1219_p13 }
  0x93   : > { %v1083_v37 = vpop.eup %1082  ;;  %724 = vst [vmem:[%s1440_s17 + $0x258] sm:$0xff] %v1081_v33  ;;  %1102 = vpow2.f32 %v565_v22  ;;  %v597_v22 = vmul.f32 1.442695, %v367_v7  ;;  %v383_v7 = vmul.f32 0.5, %v255_v60 }
  0x94   : > { %v1085_v41 = vpop.eup %1084  ;;  %725 = vst [vmem:[%s1440_s17 + $0x260] sm:$0xff] %v1083_v37  ;;  %1104 = vpow2.f32 %v567_v26  ;;  %v599_v26 = vmul.f32 1.442695, %v368_v11  ;;  %v384_v11 = vmul.f32 0.5, %v256_v0 }
  0x95   : > { %v1087_v45 = vpop.eup %1086  ;;  %726 = vst [vmem:[%s1440_s17 + $0x268] sm:$0xff] %v1085_v41  ;;  %1106 = vpow2.f32 %v569_v30  ;;  %v601_v30 = vmul.f32 1.442695, %v369_v15  ;;  %v385_v15 = vmul.f32 0.5, %v257_v4 }
  0x96   : > { %v1089_v49 = vpop.eup %1088  ;;  %727 = vst [vmem:[%s1440_s17 + $0x270] sm:$0xff] %v1087_v45  ;;  %1108 = vpow2.f32 %v571_v34  ;;  %v603_v34 = vmul.f32 1.442695, %v370_v19  ;;  %v386_v19 = vmul.f32 0.5, %v258_v8 }
  0x97   : > { %v1091_v53 = vpop.eup %1090  ;;  %728 = vst [vmem:[%s1440_s17 + $0x278] sm:$0xff] %v1089_v49  ;;  %1110 = vpow2.f32 %v573_v38  ;;  %v605_v38 = vmul.f32 1.442695, %v371_v23  ;;  %v387_v23 = vmul.f32 0.5, %v259_v12 }
  0x98   : > { %v1093_v57 = vpop.eup %1092  ;;  %729 = vst [vmem:[%s1440_s17 + $0x280] sm:$0xff] %v1091_v53  ;;  %1112 = vpow2.f32 %v575_v42  ;;  %v607_v42 = vmul.f32 1.442695, %v372_v27  ;;  %v388_v27 = vmul.f32 0.5, %v260_v16 }
  0x99   : > { %v1095_v61 = vpop.eup %1094  ;;  %730 = vst [vmem:[%s1440_s17 + $0x288] sm:$0xff] %v1093_v57  ;;  %1114 = vpow2.f32 %v577_v46  ;;  %v609_v46 = vmul.f32 1.442695, %v373_v31  ;;  %v389_v31 = vmul.f32 0.5, %v261_v20 }
  0x9a   : > { %v1097_v1 = vpop.eup %1096  ;;  %731 = vst [vmem:[%s1440_s17 + $0x290] sm:$0xff] %v1095_v61  ;;  %1116 = vpow2.f32 %v579_v50  ;;  %v611_v50 = vmul.f32 1.442695, %v374_v35  ;;  %v390_v35 = vmul.f32 0.5, %v262_v24  ;;  %v639_v40 = vmul.f32 1.442695, %v388_v27 }
  0x9b   : > { %v1099_v5 = vpop.eup %1098  ;;  %732 = vst [vmem:[%s1440_s17 + $0x298] sm:$0xff] %v1097_v1  ;;  %1118 = vpow2.f32 %v581_v54  ;;  %v613_v54 = vmul.f32 1.442695, %v375_v39 }
  0x9c   : > { %v1101_v9 = vpop.eup %1100  ;;  %733 = vst [vmem:[%s1440_s17 + $0x2a0] sm:$0xff] %v1099_v5  ;;  %1120 = vpow2.f32 %v583_v58  ;;  %v615_v58 = vmul.f32 1.442695, %v376_v43  ;;  %v641_v43 = vmul.f32 1.442695, %v389_v31 }
  0x9d   : > { %v1103_v13 = vpop.eup %1102  ;;  %734 = vst [vmem:[%s1440_s17 + $0x2a8] sm:$0xff] %v1101_v9  ;;  %1122 = vpow2.f32 %v585_v62  ;;  %v617_v62 = vmul.f32 1.442695, %v377_v47 }
  0x9e   : > { %v1105_v17 = vpop.eup %1104  ;;  %735 = vst [vmem:[%s1440_s17 + $0x2b0] sm:$0xff] %v1103_v13  ;;  %1124 = vpow2.f32 %v587_v2  ;;  %v619_v2 = vmul.f32 1.442695, %v378_v51 }
  0x9f   : > { %v1107_v21 = vpop.eup %1106  ;;  %736 = vst [vmem:[%s1440_s17 + $0x2b8] sm:$0xff] %v1105_v17  ;;  %1126 = vpow2.f32 %v589_v6  ;;  %v621_v6 = vmul.f32 1.442695, %v379_v55 }
  0xa0   : > { %v1109_v25 = vpop.eup %1108  ;;  %737 = vst [vmem:[%s1440_s17 + $0x2c0] sm:$0xff] %v1107_v21  ;;  %1128 = vpow2.f32 %v591_v10  ;;  %v623_v10 = vmul.f32 1.442695, %v380_v59 }
  0xa1   : > { %v1111_v29 = vpop.eup %1110  ;;  %738 = vst [vmem:[%s1440_s17 + $0x2c8] sm:$0xff] %v1109_v25  ;;  %1130 = vpow2.f32 %v593_v14  ;;  %v625_v14 = vmul.f32 1.442695, %v381_v63 }
  0xa2   : > { %v1113_v33 = vpop.eup %1112  ;;  %739 = vst [vmem:[%s1440_s17 + $0x2d0] sm:$0xff] %v1111_v29  ;;  %1132 = vpow2.f32 %v595_v18  ;;  %v627_v18 = vmul.f32 1.442695, %v382_v3 }
  0xa3   : > { %v1115_v37 = vpop.eup %1114  ;;  %740 = vst [vmem:[%s1440_s17 + $0x2d8] sm:$0xff] %v1113_v33  ;;  %1134 = vpow2.f32 %v597_v22  ;;  %v629_v22 = vmul.f32 1.442695, %v383_v7 }
  0xa4   : > { %v1117_v41 = vpop.eup %1116  ;;  %741 = vst [vmem:[%s1440_s17 + $0x2e0] sm:$0xff] %v1115_v37  ;;  %1136 = vpow2.f32 %v599_v26  ;;  %v631_v26 = vmul.f32 1.442695, %v384_v11  ;;  %v637_v37 = vmul.f32 1.442695, %v387_v23 }
  0xa5   : > { %v1119_v45 = vpop.eup %1118  ;;  %742 = vst [vmem:[%s1440_s17 + $0x2e8] sm:$0xff] %v1117_v41  ;;  %1138 = vpow2.f32 %v601_v30  ;;  %v633_v30 = vmul.f32 1.442695, %v385_v15  ;;  %v392_v41 = vmul.f32 0.5, %v264_v32 }
  0xa6   : > { %v1121_v49 = vpop.eup %1120  ;;  %743 = vst [vmem:[%s1440_s17 + $0x2f0] sm:$0xff] %v1119_v45  ;;  %1140 = vpow2.f32 %v603_v34  ;;  %v635_v34 = vmul.f32 1.442695, %v386_v19  ;;  %v643_v45 = vmul.f32 1.442695, %v390_v35 }
  0xa7   : > { %v1123_v53 = vpop.eup %1122  ;;  %744 = vst [vmem:[%s1440_s17 + $0x2f8] sm:$0xff] %v1121_v49  ;;  %1142 = vpow2.f32 %v605_v38  ;;  %v391_v38 = vmul.f32 0.5, %v263_v28  ;;  %v647_v49 = vmul.f32 1.442695, %v392_v41 }
  0xa8   : > { %v1125_v57 = vpop.eup %1124  ;;  %745 = vst [vmem:[%s1440_s17 + $0x300] sm:$0xff] %v1123_v53  ;;  %1144 = vpow2.f32 %v607_v42 }
  0xa9   : > { %v1127_v61 = vpop.eup %1126  ;;  %746 = vst [vmem:[%s1440_s17 + $0x308] sm:$0xff] %v1125_v57  ;;  %1146 = vpow2.f32 %v609_v46  ;;  %v645_v47 = vmul.f32 1.442695, %v391_v38 }
  0xaa   : > { %v1129_v1 = vpop.eup %1128  ;;  %747 = vst [vmem:[%s1440_s17 + $0x310] sm:$0xff] %v1127_v61  ;;  %1148 = vpow2.f32 %v611_v50 }
  0xab   : > { %v1131_v5 = vpop.eup %1130  ;;  %748 = vst [vmem:[%s1440_s17 + $0x318] sm:$0xff] %v1129_v1  ;;  %1150 = vpow2.f32 %v613_v54 }
  0xac   : > { %v1133_v9 = vpop.eup %1132  ;;  %749 = vst [vmem:[%s1440_s17 + $0x320] sm:$0xff] %v1131_v5  ;;  %1152 = vpow2.f32 %v615_v58 }
  0xad   : > { %v1135_v13 = vpop.eup %1134  ;;  %750 = vst [vmem:[%s1440_s17 + $0x328] sm:$0xff] %v1133_v9  ;;  %1154 = vpow2.f32 %v617_v62 }
  0xae   : > { %v1137_v17 = vpop.eup %1136  ;;  %751 = vst [vmem:[%s1440_s17 + $0x330] sm:$0xff] %v1135_v13  ;;  %1156 = vpow2.f32 %v619_v2 }
  0xaf   : > { %v1139_v21 = vpop.eup %1138  ;;  %752 = vst [vmem:[%s1440_s17 + $0x338] sm:$0xff] %v1137_v17  ;;  %1158 = vpow2.f32 %v621_v6 }
  0xb0   : > { %v1141_v25 = vpop.eup %1140  ;;  %753 = vst [vmem:[%s1440_s17 + $0x340] sm:$0xff] %v1139_v21  ;;  %1160 = vpow2.f32 %v623_v10 }
  0xb1   : > { %v1143_v29 = vpop.eup %1142  ;;  %754 = vst [vmem:[%s1440_s17 + $0x348] sm:$0xff] %v1141_v25  ;;  %1162 = vpow2.f32 %v625_v14 }
  0xb2   : > { %v1145_v33 = vpop.eup %1144  ;;  %755 = vst [vmem:[%s1440_s17 + $0x350] sm:$0xff] %v1143_v29  ;;  %1164 = vpow2.f32 %v627_v18 }
  0xb3   : > { %v1147_v36 = vpop.eup %1146  ;;  %756 = vst [vmem:[%s1440_s17 + $0x358] sm:$0xff] %v1145_v33  ;;  %1166 = vpow2.f32 %v629_v22 }
  0xb4   : > { %v1149_v39 = vpop.eup %1148  ;;  %757 = vst [vmem:[%s1440_s17 + $0x360] sm:$0xff] %v1147_v36  ;;  %1168 = vpow2.f32 %v631_v26 }
  0xb5   : > { %v1151_v42 = vpop.eup %1150  ;;  %758 = vst [vmem:[%s1440_s17 + $0x368] sm:$0xff] %v1149_v39  ;;  %1170 = vpow2.f32 %v633_v30 }
  0xb6   : > { %v1153_v44 = vpop.eup %1152  ;;  %759 = vst [vmem:[%s1440_s17 + $0x370] sm:$0xff] %v1151_v42  ;;  %1172 = vpow2.f32 %v635_v34 }
  0xb7   : > { %v1155_v46 = vpop.eup %1154  ;;  %760 = vst [vmem:[%s1440_s17 + $0x378] sm:$0xff] %v1153_v44  ;;  %1174 = vpow2.f32 %v637_v37 }
  0xb8   : > { %v1157_v48 = vpop.eup %1156  ;;  %761 = vst [vmem:[%s1440_s17 + $0x380] sm:$0xff] %v1155_v46  ;;  %1176 = vpow2.f32 %v639_v40 }
  0xb9   : > { %v1159_v50 = vpop.eup %1158  ;;  %762 = vst [vmem:[%s1440_s17 + $0x388] sm:$0xff] %v1157_v48  ;;  %1178 = vpow2.f32 %v641_v43 }
  0xba   : > { %v1161_v51 = vpop.eup %1160  ;;  %763 = vst [vmem:[%s1440_s17 + $0x390] sm:$0xff] %v1159_v50  ;;  %1180 = vpow2.f32 %v643_v45 }
  0xbb   : > { %v1163_v52 = vpop.eup %1162  ;;  %764 = vst [vmem:[%s1440_s17 + $0x398] sm:$0xff] %v1161_v51  ;;  %1182 = vpow2.f32 %v645_v47 }
  0xbc   : > { %v1165_v53 = vpop.eup %1164  ;;  %765 = vst [vmem:[%s1440_s17 + $0x3a0] sm:$0xff] %v1163_v52  ;;  %1184 = vpow2.f32 %v647_v49 }
  0xbd   : > { %v1167_v54 = vpop.eup %1166  ;;  %766 = vst [vmem:[%s1440_s17 + $0x3a8] sm:$0xff] %v1165_v53 }
  0xbe   : > { %v1169_v55 = vpop.eup %1168  ;;  %767 = vst [vmem:[%s1440_s17 + $0x3b0] sm:$0xff] %v1167_v54 }
  0xbf   : > { %v1171_v56 = vpop.eup %1170  ;;  %768 = vst [vmem:[%s1440_s17 + $0x3b8] sm:$0xff] %v1169_v55 }
  0xc0   : > { %v1173_v57 = vpop.eup %1172  ;;  %769 = vst [vmem:[%s1440_s17 + $0x3c0] sm:$0xff] %v1171_v56 }
  0xc1   : > { %v1175_v58 = vpop.eup %1174  ;;  %770 = vst [vmem:[%s1440_s17 + $0x3c8] sm:$0xff] %v1173_v57 }
  0xc2   : > { %v1177_v59 = vpop.eup %1176  ;;  %771 = vst [vmem:[%s1440_s17 + $0x3d0] sm:$0xff] %v1175_v58 }
  0xc3   : > { %v1179_v60 = vpop.eup %1178  ;;  %772 = vst [vmem:[%s1440_s17 + $0x3d8] sm:$0xff] %v1177_v59 }
  0xc4   : > { %v1181_v61 = vpop.eup %1180  ;;  %773 = vst [vmem:[%s1440_s17 + $0x3e0] sm:$0xff] %v1179_v60 }
  0xc5   : > { %v1183_v62 = vpop.eup %1182  ;;  %774 = vst [vmem:[%s1440_s17 + $0x3e8] sm:$0xff] %v1181_v61 }
  0xc6   : > { %v1185_v63 = vpop.eup %1184  ;;  %775 = vst [vmem:[%s1440_s17 + $0x3f0] sm:$0xff] %v1183_v62 }
  0xc7   : > { %776 = vst [vmem:[%s1440_s17 + $0x3f8] sm:$0xff] %v1185_v63 }
  0xc8   : > { %1229 = shalt.err (!%p1226_p2)
}
  0xc9   : > { %s1230_s13 = scalar_lea.hbm %s1678_s2, 16384  ;;  %s1234_s20 = scalar_lea.hbm %s1728_s1, 32768 }
  0xca   : > { %p1231_p4 = scmp.ne.s32.totalorder %s1678_s2, %s1230_s13  ;;  %p1235_p9 = scmp.lt.u32.totalorder %s1678_s2, %s1728_s1 }
  0xcb   : > { %p1236_p1 = scmp.lt.u32.totalorder %s1234_s20, %s1230_s13  ;;  %p1238_p6 = scmp.lt.u32.totalorder %s1230_s13, %s1678_s2 }
  0xcc   : > { %p1232_p5 = pnand %p1231_p4, %p1735_p11 }
  0xcd   : > { %p1237_p3 = por %p1236_p1, %p1235_p9 }
  0xce   : > { %p1233_p7 = pneg %p1232_p5 }
  0xcf   : > { %p1239_p12 = por %p1238_p6, %p1237_p3 }
  0xd1   : > { %p1240_p13 = pnand %p1239_p12, %p1233_p7 }
  0xd3   : > { %1243 = shalt.err (!%p1240_p13)
}
  0xd4   : > { %s1288_s24 = smov 128   ;;  %s1289_s26 = smov 8  }
  0xd5   : > { %882 = dma.vmem_to_hbm [thread:$0]  (%p1735_p11), %s1680_s27, 16384, %s1678_s2, %s778_s10, %s1288_s24, %s1288_s24, %s1289_s26  }
  0xd6 PF: > { %s806_s30 = sand.u32 1, %s1270_s6   ;;  %p1736_p8 = scmp.ne.s32.totalorder %s1733_s19, 0 }
  0xd7   : > { %p1737_p10 = scmp.ge.s32.totalorder %s1282_s9, 2  ;;  %s807_s17 = scalar_lea.sflag [#allocation4], %s806_s30 }
  0xd9   : > { %p889_p0 = pnand %p1737_p10, %p1736_p8 }
  0xdb   : > { %1265 = dma.done.wait (!%p889_p0), %s807_s17, 16384  }
  0xdc   : > { %1267 = vsyncadd (!%p889_p0), %s807_s17, 4294950912  ;;  %p14_p2 = scmp.ge.s32.totalorder %s1325_s12, 4   ;;  %s1738_s6 = smov %s1274_s7 }
  0xdd   : > { %s1739_s7 = smov %s1278_s8  ;;  %s1740_s8 = smov %s1337_s15 }
  0xde   : > { %s1741_s9 = smov %s1325_s12  ;;  %16 = sbr.rel (!%p14_p2) target bundleno = 5 (0x5), region = 69 }
  0xe5   :  { %812 = vsyncpa [#allocation3], 1 }
  0xe6   :  { %814 = vsyncpa [#allocation3 + $0x1], 1 }
  0xe7   :  { %815 = vsyncpa [#allocation4], 1 }
  0xe8   :  { %817 = vsyncpa [#allocation4 + $0x1], 1 }

</bundles_post_ra>
